<compile_context>
chip_gen: v6e
topology: v6e:2x2x1
jax: 0.10.0
libtpu: 0.0.40
codegen_flags: <defaults>
</compile_context>

<pallas_src>
import jax
import jax.numpy as jnp
from jax.experimental import pallas as pl
from jax.experimental.pallas import tpu as pltpu


def _softplus(x):
    # Numerically-stable softplus: max(x, 0) + log1p(exp(-|x|))
    return jnp.maximum(x, 0.0) + jnp.log1p(jnp.exp(-jnp.abs(x)))


def _make_kernel(n_shared: int, eps: float):
    """Kernel: n_shared (Linear+ReLU) layers + mean head + softplus std head."""

    def kernel(*refs):
        # refs layout:
        #   x_ref (tb, in) f32,
        #   (w_i bf16, b_i f32) * n_shared,
        #   w_mean bf16, b_mean f32, w_std bf16, b_std f32,
        #   mean_ref (tb, out), std_ref (tb, out)
        x_ref = refs[0]
        idx = 1

        # Cast f32 -> bf16 in-kernel (free on the VPU); avoids a separate
        # wrapper-side HBM cast pass over the activations.
        h = x_ref[...].astype(jnp.bfloat16)

        for _ in range(n_shared):
            w_ref, b_ref = refs[idx], refs[idx + 1]
            idx += 2
            z = jnp.dot(h, w_ref[...], preferred_element_type=jnp.float32)
            z = jnp.maximum(z + b_ref[...], 0.0)      # Linear + ReLU in f32
            h = z.astype(jnp.bfloat16)                # bf16 operand for next MXU op

        wm_ref, bm_ref, ws_ref, bs_ref = refs[idx:idx + 4]
        mean_ref, std_ref = refs[idx + 4], refs[idx + 5]

        zm = jnp.dot(h, wm_ref[...], preferred_element_type=jnp.float32) + bm_ref[...]
        zs = jnp.dot(h, ws_ref[...], preferred_element_type=jnp.float32) + bs_ref[...]
        zs = _softplus(zs) + eps                      # f32 epilogue math

        mean_ref[...] = zm.astype(mean_ref.dtype)
        std_ref[...] = zs.astype(std_ref.dtype)

    return kernel


def _round_up(x: int, m: int) -> int:
    return ((x + m - 1) // m) * m


# Below this row count a single grid step is used (splitting tiny batches only
# adds per-step overhead; the v7x 2-TC win needs enough rows per half).
_MIN_SPLIT_ROWS = 256


def multi_linear_gaussian_statistic(x, params, eps: float = 1e-4,
                                    max_batch_tile: int = 4096,
                                    out_dtype=jnp.bfloat16):
    """Forward pass.

    x:      (batch, input_dims) float32
    params: dict with keys:
        'shared': list of (W, b) with W (in, out), b (1, out)
        'mean':   (W, b)
        'std':    (W, b)
    returns (z_mean, z_std), each (batch, output_dims) in `out_dtype`.
    """
    shared = params["shared"]
    w_mean, b_mean = params["mean"]
    w_std, b_std = params["std"]

    batch, input_dims = x.shape
    output_dims = w_mean.shape[1]

    # ---- parameter preparation (weights bf16 once, biases f32) ----
    flat_inputs = [x]                                  # x stays f32
    for w, b in shared:
        flat_inputs += [w.astype(jnp.bfloat16), b.astype(jnp.float32)]
    flat_inputs += [w_mean.astype(jnp.bfloat16), b_mean.astype(jnp.float32),
                    w_std.astype(jnp.bfloat16), b_std.astype(jnp.float32)]

    # Constant index_maps -> parameters resident in VMEM across all batch tiles.
    param_specs = [pl.BlockSpec(a.shape, lambda i: (0, 0)) for a in flat_inputs[1:]]

    # ---- batch tiling ----
    if batch > max_batch_tile:
        tb = max_batch_tile                            # multiple of 16
    elif batch >= 2 * _MIN_SPLIT_ROWS:
        # Medium batch: force >= 2 grid steps so "parallel" can use both
        # TensorCores on v7x (no-op on v5e/v6e). Tiles are multiples of 16.
        tb = min(max_batch_tile, _round_up(pl.cdiv(batch, 2), 16))
    else:
        tb = batch                                     # full-extent block (always legal)
    grid = (pl.cdiv(batch, tb),)

    # If xprof ever shows exposed activation DMA, add
    # pipeline_mode=pl.Buffered(3) here (cheap: per-tile copies are tiny).
    x_spec = pl.BlockSpec((tb, input_dims), lambda i: (i, 0))
    out_spec = pl.BlockSpec((tb, output_dims), lambda i: (i, 0))

    # ---- cost estimate (advisory) ----
    flops = 0
    last = input_dims
    for w, _ in shared:
        flops += 2 * batch * last * w.shape[1]
        last = w.shape[1]
    flops += 2 * (2 * batch * last * output_dims)       # two heads
    transcendentals = 2 * batch * output_dims           # exp + log1p on std head
    out_bytes = 2 * batch * output_dims * jnp.dtype(out_dtype).itemsize
    bytes_accessed = (x.size * x.dtype.itemsize
                      + sum(a.size * a.dtype.itemsize for a in flat_inputs[1:])
                      + out_bytes)

    kernel = _make_kernel(len(shared), eps)

    z_mean, z_std = pl.pallas_call(
        kernel,
        out_shape=(jax.ShapeDtypeStruct((batch, output_dims), out_dtype),
                   jax.ShapeDtypeStruct((batch, output_dims), out_dtype)),
        grid=grid,
        in_specs=[x_spec] + param_specs,
        out_specs=(out_spec, out_spec),
        compiler_params=pltpu.CompilerParams(
            dimension_semantics=("parallel",),
        ),
        cost_estimate=pl.CostEstimate(
            flops=flops,
            transcendentals=transcendentals,
            bytes_accessed=bytes_accessed,
        ),
    )(*flat_inputs)

    return z_mean, z_std


def init_params(key, input_dims, output_dims, net_size):
    """Deterministic PyTorch-Linear-style init: U(-1/sqrt(fan_in), 1/sqrt(fan_in))."""
    params = {"shared": []}
    last = input_dims
    for size in net_size:
        key, kw, kb = jax.random.split(key, 3)
        bound = 1.0 / jnp.sqrt(last)
        w = jax.random.uniform(kw, (last, size), jnp.float32, -bound, bound)
        b = jax.random.uniform(kb, (1, size), jnp.float32, -bound, bound)
        params["shared"].append((w, b))
        last = size
    for head in ("mean", "std"):
        key, kw, kb = jax.random.split(key, 3)
        bound = 1.0 / jnp.sqrt(last)
        w = jax.random.uniform(kw, (last, output_dims), jnp.float32, -bound, bound)
        b = jax.random.uniform(kb, (1, output_dims), jnp.float32, -bound, bound)
        params[head] = (w, b)
    return params


def reference_forward_f32(x, params, eps=1e-4):
    h = x
    for w, b in params["shared"]:
        h = jnp.maximum(h @ w + b, 0.0)
    z_mean = h @ params["mean"][0] + params["mean"][1]
    z_std = _softplus(h @ params["std"][0] + params["std"][1]) + eps
    return z_mean, z_std


def reference_forward_bf16(x, params, eps=1e-4):
    """Pure-JAX reference mimicking the kernel's bf16-operand / f32-accumulate math."""
    h = x.astype(jnp.bfloat16)
    for w, b in params["shared"]:
        z = jnp.dot(h, w.astype(jnp.bfloat16), preferred_element_type=jnp.float32) + b
        h = jnp.maximum(z, 0.0).astype(jnp.bfloat16)
    zm = jnp.dot(h, params["mean"][0].astype(jnp.bfloat16),
                 preferred_element_type=jnp.float32) + params["mean"][1]
    zs_pre = jnp.dot(h, params["std"][0].astype(jnp.bfloat16),
                     preferred_element_type=jnp.float32) + params["std"][1]
    zs = _softplus(zs_pre) + eps
    return zm, zs


def _check(x, params, eps):
    z_mean, z_std = multi_linear_gaussian_statistic(x, params, eps)
    jax.block_until_ready((z_mean, z_std))

    batch = x.shape[0]
    output_dims = params["mean"][0].shape[1]
    assert z_mean.shape == (batch, output_dims)
    assert z_std.shape == (batch, output_dims)

    zm = z_mean.astype(jnp.float32)
    zs = z_std.astype(jnp.float32)

    # Tight check vs bf16-operand / f32-accumulate reference (bf16 output rounding only).
    ref_mean_bf, ref_std_bf = reference_forward_bf16(x, params, eps)
    assert jnp.allclose(zm, ref_mean_bf, atol=2e-2, rtol=2e-2)
    assert jnp.allclose(zs, ref_std_bf, atol=2e-2, rtol=2e-2)

    # Loose check vs full-f32 reference (bf16 MXU operands -> ~1% error).
    ref_mean, ref_std = reference_forward_f32(x, params, eps)
    assert jnp.allclose(zm, ref_mean, atol=1e-1, rtol=1e-1)
    assert jnp.allclose(zs, ref_std, atol=1e-1, rtol=1e-1)

    assert bool(jnp.all(zs > 0.0))


if __name__ == "__main__":
    key = jax.random.PRNGKey(0)

    input_dims = 32
    output_dims = 16
    net_size = (64, 32)
    eps = 1e-4

    key, kp = jax.random.split(key)
    params = init_params(kp, input_dims, output_dims, net_size)

    # Small batch: single grid step (full-extent block).
    key, kx = jax.random.split(key)
    x_small = jax.random.normal(kx, (8, input_dims), jnp.float32)
    _check(x_small, params, eps)

    # Medium batch: exercises the >=2-grid-step split and a clipped last block.
    key, kx = jax.random.split(key)
    x_med = jax.random.normal(kx, (700, input_dims), jnp.float32)
    _check(x_med, params, eps)

    print("KERNEL_OK")
</pallas_src>

<mosaic_0001>
module attributes {stable_mosaic.version = 11 : i64} {
  func.func @kernel(%arg0: i32, %arg1: memref<8x32xf32, #tpu.memory_space<vmem>>, %arg2: memref<32x64xbf16, #tpu.memory_space<vmem>>, %arg3: memref<1x64xf32, #tpu.memory_space<vmem>>, %arg4: memref<64x32xbf16, #tpu.memory_space<vmem>>, %arg5: memref<1x32xf32, #tpu.memory_space<vmem>>, %arg6: memref<32x16xbf16, #tpu.memory_space<vmem>>, %arg7: memref<1x16xf32, #tpu.memory_space<vmem>>, %arg8: memref<32x16xbf16, #tpu.memory_space<vmem>>, %arg9: memref<1x16xf32, #tpu.memory_space<vmem>>, %arg10: memref<8x16xbf16, #tpu.memory_space<vmem>>, %arg11: memref<8x16xbf16, #tpu.memory_space<vmem>>) attributes {dimension_semantics = [#tpu.dimension_semantics<parallel>], iteration_bounds = array<i64: 1>, scalar_prefetch = 0 : i64, scratch_operands = 0 : i64, tpu.core_type = #tpu.core_type<tc>, window_params = [{transform_indices = @transform_0, window_bounds = array<i64: 8, 32>}, {pipeline_mode = #tpu.pipeline_mode<synchronous>, transform_indices = @transform_1, window_bounds = array<i64: 32, 64>}, {pipeline_mode = #tpu.pipeline_mode<synchronous>, transform_indices = @transform_2, window_bounds = array<i64: 1, 64>}, {pipeline_mode = #tpu.pipeline_mode<synchronous>, transform_indices = @transform_3, window_bounds = array<i64: 64, 32>}, {pipeline_mode = #tpu.pipeline_mode<synchronous>, transform_indices = @transform_4, window_bounds = array<i64: 1, 32>}, {pipeline_mode = #tpu.pipeline_mode<synchronous>, transform_indices = @transform_5, window_bounds = array<i64: 32, 16>}, {pipeline_mode = #tpu.pipeline_mode<synchronous>, transform_indices = @transform_6, window_bounds = array<i64: 1, 16>}, {pipeline_mode = #tpu.pipeline_mode<synchronous>, transform_indices = @transform_7, window_bounds = array<i64: 32, 16>}, {pipeline_mode = #tpu.pipeline_mode<synchronous>, transform_indices = @transform_8, window_bounds = array<i64: 1, 16>}, {transform_indices = @transform_9, window_bounds = array<i64: 8, 16>}, {transform_indices = @transform_10, window_bounds = array<i64: 8, 16>}]} {
    %c0 = arith.constant 0 : index
    %c0_0 = arith.constant 0 : index
    %0 = vector.load %arg1[%c0, %c0_0] : memref<8x32xf32, #tpu.memory_space<vmem>>, vector<8x32xf32>
    %1 = arith.truncf %0 : vector<8x32xf32> to vector<8x32xbf16>
    %c0_1 = arith.constant 0 : index
    %c0_2 = arith.constant 0 : index
    %2 = vector.load %arg2[%c0_1, %c0_2] : memref<32x64xbf16, #tpu.memory_space<vmem>>, vector<32x64xbf16>
    %cst = arith.constant dense<0.000000e+00> : vector<8x64xf32>
    %3 = tpu.matmul %1, %2, %cst {dimension_numbers = #tpu.dot_dimension_numbers<[1], [0], [0], [1], [0, 0, 1, 1], [], []>} : vector<8x32xbf16>, vector<32x64xbf16>, vector<8x64xf32> -> vector<8x64xf32>
    %c0_3 = arith.constant 0 : index
    %c0_4 = arith.constant 0 : index
    %4 = vector.load %arg3[%c0_3, %c0_4] : memref<1x64xf32, #tpu.memory_space<vmem>>, vector<1x64xf32>
    %5 = vector.broadcast %4 : vector<1x64xf32> to vector<8x64xf32>
    %6 = arith.addf %3, %5 : vector<8x64xf32>
    %cst_5 = arith.constant 0.000000e+00 : f32
    %7 = vector.broadcast %cst_5 : f32 to vector<8x64xf32>
    %8 = arith.maximumf %6, %7 : vector<8x64xf32>
    %9 = arith.truncf %8 : vector<8x64xf32> to vector<8x64xbf16>
    %c0_6 = arith.constant 0 : index
    %c0_7 = arith.constant 0 : index
    %10 = vector.load %arg4[%c0_6, %c0_7] : memref<64x32xbf16, #tpu.memory_space<vmem>>, vector<64x32xbf16>
    %cst_8 = arith.constant dense<0.000000e+00> : vector<8x32xf32>
    %11 = tpu.matmul %9, %10, %cst_8 {dimension_numbers = #tpu.dot_dimension_numbers<[1], [0], [0], [1], [0, 0, 1, 1], [], []>} : vector<8x64xbf16>, vector<64x32xbf16>, vector<8x32xf32> -> vector<8x32xf32>
    %c0_9 = arith.constant 0 : index
    %c0_10 = arith.constant 0 : index
    %12 = vector.load %arg5[%c0_9, %c0_10] : memref<1x32xf32, #tpu.memory_space<vmem>>, vector<1x32xf32>
    %13 = vector.broadcast %12 : vector<1x32xf32> to vector<8x32xf32>
    %14 = arith.addf %11, %13 : vector<8x32xf32>
    %cst_11 = arith.constant 0.000000e+00 : f32
    %15 = vector.broadcast %cst_11 : f32 to vector<8x32xf32>
    %16 = arith.maximumf %14, %15 : vector<8x32xf32>
    %17 = arith.truncf %16 : vector<8x32xf32> to vector<8x32xbf16>
    %c0_12 = arith.constant 0 : index
    %c0_13 = arith.constant 0 : index
    %18 = vector.load %arg6[%c0_12, %c0_13] : memref<32x16xbf16, #tpu.memory_space<vmem>>, vector<32x16xbf16>
    %cst_14 = arith.constant dense<0.000000e+00> : vector<8x16xf32>
    %19 = tpu.matmul %17, %18, %cst_14 {dimension_numbers = #tpu.dot_dimension_numbers<[1], [0], [0], [1], [0, 0, 1, 1], [], []>} : vector<8x32xbf16>, vector<32x16xbf16>, vector<8x16xf32> -> vector<8x16xf32>
    %c0_15 = arith.constant 0 : index
    %c0_16 = arith.constant 0 : index
    %20 = vector.load %arg7[%c0_15, %c0_16] : memref<1x16xf32, #tpu.memory_space<vmem>>, vector<1x16xf32>
    %21 = vector.broadcast %20 : vector<1x16xf32> to vector<8x16xf32>
    %22 = arith.addf %19, %21 : vector<8x16xf32>
    %c0_17 = arith.constant 0 : index
    %c0_18 = arith.constant 0 : index
    %23 = vector.load %arg8[%c0_17, %c0_18] : memref<32x16xbf16, #tpu.memory_space<vmem>>, vector<32x16xbf16>
    %cst_19 = arith.constant dense<0.000000e+00> : vector<8x16xf32>
    %24 = tpu.matmul %17, %23, %cst_19 {dimension_numbers = #tpu.dot_dimension_numbers<[1], [0], [0], [1], [0, 0, 1, 1], [], []>} : vector<8x32xbf16>, vector<32x16xbf16>, vector<8x16xf32> -> vector<8x16xf32>
    %c0_20 = arith.constant 0 : index
    %c0_21 = arith.constant 0 : index
    %25 = vector.load %arg9[%c0_20, %c0_21] : memref<1x16xf32, #tpu.memory_space<vmem>>, vector<1x16xf32>
    %26 = vector.broadcast %25 : vector<1x16xf32> to vector<8x16xf32>
    %27 = arith.addf %24, %26 : vector<8x16xf32>
    %cst_22 = arith.constant 0.000000e+00 : f32
    %28 = vector.broadcast %cst_22 : f32 to vector<8x16xf32>
    %29 = arith.maximumf %27, %28 : vector<8x16xf32>
    %30 = math.absf %27 : vector<8x16xf32>
    %cst_23 = arith.constant 0.000000e+00 : f32
    %31 = vector.broadcast %cst_23 : f32 to vector<8x16xf32>
    %32 = arith.subf %31, %30 : vector<8x16xf32>
    %33 = math.exp %32 : vector<8x16xf32>
    %34 = math.log1p %33 : vector<8x16xf32>
    %35 = arith.addf %29, %34 : vector<8x16xf32>
    %cst_24 = arith.constant 9.99999974E-5 : f32
    %36 = vector.broadcast %cst_24 : f32 to vector<8x16xf32>
    %37 = arith.addf %35, %36 : vector<8x16xf32>
    %38 = arith.truncf %22 : vector<8x16xf32> to vector<8x16xbf16>
    %c0_25 = arith.constant 0 : index
    %c0_26 = arith.constant 0 : index
    %39 = vector.load %arg10[%c0_25, %c0_26] : memref<8x16xbf16, #tpu.memory_space<vmem>>, vector<8x16xbf16>
    tpu.vector_store %arg10[%c0_25, %c0_26], %38 {strides = array<i32>} : memref<8x16xbf16, #tpu.memory_space<vmem>>, vector<8x16xbf16>,
    %40 = arith.truncf %37 : vector<8x16xf32> to vector<8x16xbf16>
    %c0_27 = arith.constant 0 : index
    %c0_28 = arith.constant 0 : index
    %41 = vector.load %arg11[%c0_27, %c0_28] : memref<8x16xbf16, #tpu.memory_space<vmem>>, vector<8x16xbf16>
    tpu.vector_store %arg11[%c0_27, %c0_28], %40 {strides = array<i32>} : memref<8x16xbf16, #tpu.memory_space<vmem>>, vector<8x16xbf16>,
    return
  }
  func.func @transform_0(%arg0: i32) -> (i32, i32) {
    %c0_i32 = arith.constant 0 : i32
    %c0_i32_0 = arith.constant 0 : i32
    return %arg0, %c0_i32 : i32, i32
  }
  func.func @transform_1(%arg0: i32) -> (i32, i32) {
    %c0_i32 = arith.constant 0 : i32
    %c0_i32_0 = arith.constant 0 : i32
    %c0_i32_1 = arith.constant 0 : i32
    return %c0_i32, %c0_i32_0 : i32, i32
  }
  func.func @transform_2(%arg0: i32) -> (i32, i32) {
    %c0_i32 = arith.constant 0 : i32
    %c0_i32_0 = arith.constant 0 : i32
    %c0_i32_1 = arith.constant 0 : i32
    return %c0_i32, %c0_i32_0 : i32, i32
  }
  func.func @transform_3(%arg0: i32) -> (i32, i32) {
    %c0_i32 = arith.constant 0 : i32
    %c0_i32_0 = arith.constant 0 : i32
    %c0_i32_1 = arith.constant 0 : i32
    return %c0_i32, %c0_i32_0 : i32, i32
  }
  func.func @transform_4(%arg0: i32) -> (i32, i32) {
    %c0_i32 = arith.constant 0 : i32
    %c0_i32_0 = arith.constant 0 : i32
    %c0_i32_1 = arith.constant 0 : i32
    return %c0_i32, %c0_i32_0 : i32, i32
  }
  func.func @transform_5(%arg0: i32) -> (i32, i32) {
    %c0_i32 = arith.constant 0 : i32
    %c0_i32_0 = arith.constant 0 : i32
    %c0_i32_1 = arith.constant 0 : i32
    return %c0_i32, %c0_i32_0 : i32, i32
  }
  func.func @transform_6(%arg0: i32) -> (i32, i32) {
    %c0_i32 = arith.constant 0 : i32
    %c0_i32_0 = arith.constant 0 : i32
    %c0_i32_1 = arith.constant 0 : i32
    return %c0_i32, %c0_i32_0 : i32, i32
  }
  func.func @transform_7(%arg0: i32) -> (i32, i32) {
    %c0_i32 = arith.constant 0 : i32
    %c0_i32_0 = arith.constant 0 : i32
    %c0_i32_1 = arith.constant 0 : i32
    return %c0_i32, %c0_i32_0 : i32, i32
  }
  func.func @transform_8(%arg0: i32) -> (i32, i32) {
    %c0_i32 = arith.constant 0 : i32
    %c0_i32_0 = arith.constant 0 : i32
    %c0_i32_1 = arith.constant 0 : i32
    return %c0_i32, %c0_i32_0 : i32, i32
  }
  func.func @transform_9(%arg0: i32) -> (i32, i32) {
    %c0_i32 = arith.constant 0 : i32
    %c0_i32_0 = arith.constant 0 : i32
    return %arg0, %c0_i32 : i32, i32
  }
  func.func @transform_10(%arg0: i32) -> (i32, i32) {
    %c0_i32 = arith.constant 0 : i32
    %c0_i32_0 = arith.constant 0 : i32
    return %arg0, %c0_i32 : i32, i32
  }
}

</mosaic_0001>

<bundles_post_ra>
// kernel: tpu_custom_call.1
= control target key start
LH: loop header
LB: loop body
LE: loop exit
PB: predicated region body
PF: predicated region fallthrough
CT: control target
= control target key end

     0   :  { %16 = vsyncpa [#allocation3], 0  ;;  %v501_v1 = vmov 0.0   ;;  %vm502_vm0 = vmmov 0   ;;  %vm62_vm1 = vcmask 261120   ;;  %s620_s0 = inlined_call_operand.vmem [shape: f32[8,32], index: 0, kind: input, shape index: {}]   ;;  %s621_s1 = inlined_call_operand.vmem [shape: bf16[32,64], index: 1, kind: input, shape index: {}]   ;;  %s622_s2 = inlined_call_operand.vmem [shape: f32[1,64], index: 2, kind: input, shape index: {}]   ;;  %s623_s3 = inlined_call_operand.vmem [shape: bf16[64,32], index: 3, kind: input, shape index: {}]   ;;  %s624_s4 = inlined_call_operand.vmem [shape: f32[1,32], index: 4, kind: input, shape index: {}]   ;;  %s625_s5 = inlined_call_operand.vmem [shape: bf16[32,16], index: 5, kind: input, shape index: {}]   ;;  %s626_s6 = inlined_call_operand.vmem [shape: f32[1,16], index: 6, kind: input, shape index: {}]   ;;  %s627_s7 = inlined_call_operand.vmem [shape: bf16[32,16], index: 7, kind: input, shape index: {}]   ;;  %s628_s8 = inlined_call_operand.vmem [shape: f32[1,16], index: 8, kind: input, shape index: {}]   ;;  %s629_s9 = inlined_call_operand.hbm [shape: bf16[8,16], index: 9, kind: output, shape index: {0}]   ;;  %s630_s10 = inlined_call_operand.hbm [shape: bf16[8,16], index: 10, kind: output, shape index: {1}]  }
   0x1   :  { %v443_v0 = vld [vmem:[%s621_s1 + $0x8] sm:$0xff]   ;;  %403 = vmatprep.subr.bf16.mxu0 %v501_v1  ;;  %v444_v2 = vld [vmem:[%s621_s1] sm:$0xff]   ;;  %411 = vmatprep.subr.bf16.mxu1 %v501_v1  ;;  %v445_v4 = vld [vmem:[%s623_s3 + $0x18] sm:$0xff]  }
   0x2   :  { %404 = vmatpush3.bf16.msra.mxu0 %v443_v0  ;;  %407 = vmatprep.mubr.msk.bf16.mxu0 %vm502_vm0, %v501_v1  ;;  %v37_v3 = vld [vmem:[%s620_s0] sm:$0xff]  ;;  %v446_v5 = vld [vmem:[%s623_s3 + $0x10] sm:$0xff]  }
   0x3   :  { %405 = vmatprep.subr.bf16.mxu0 %v501_v1  ;;  %419 = vmatprep.mubr.msk.bf16.mxu1 %vm502_vm0, %v501_v1  ;;  %v38_v6 = vpack.c.bf16 %v37_v3, %v37_v3 }
   0x4   :  { %412 = vmatpush3.bf16.msra.mxu1 %v445_v4 }
   0x5   :  { %413 = vmatprep.subr.bf16.mxu1 %v501_v1 }
   0x6   :  { %406 = vmatpush3.bf16.msra.mxu0 %v444_v2 }
   0x7   :  { %423 = vmatprep.subr.bf16.mxu0 %v501_v1 }
   0x8   :  { %17 = vsyncpa [#allocation5], 0  ;;  %414 = vmatpush3.bf16.msra.mxu1 %v446_v5  ;;  %v447_v7 = vld [vmem:[%s623_s3 + $0x8] sm:$0xff]   ;;  %v448_v8 = vld [vmem:[%s623_s3] sm:$0xff]   ;;  %vm147_vm2 = vcmask 523264   ;;  %s503_s15 = smov [#allocation2]  }
   0x9   :  { %408 = vmatmul.mubr.msk.bf16.vlgmr.msra.gmra.mxu0 %vm62_vm1, %v38_v6  ;;  %415 = vmatprep.subr.bf16.mxu1 %v501_v1  ;;  %v449_v9 = vld [vmem:[%s625_s5 + $0x8] sm:$0xff]   ;;  %v371_v10 = vld [vmem:[%s622_s2] ss:$0 sm:$0xff]  ;;  %s349_s16 = sshll.u32 %s503_s15, 4  ;;  %vm339_vm3 = vcmask 125952   ;;  %s350_s16 = int_to_ptr.vmem [resolvable:$true] %s349_s16 }
   0xa   :  { %427 = vmatprep.mubr.msk.bf16.mxu0 %vm502_vm0, %v501_v1  ;;  %424 = vmatpush3.bf16.msra.mxu0 %v449_v9  ;;  %v450_v18 = vld [vmem:[%s625_s5] sm:$0xff]   ;;  %v451_v25 = vld [vmem:[%s627_s7 + $0x8] sm:$0xff]   ;;  %s457_s18 = scalar_lea.vmem %s350_s16, 64  ;;  %p462_p1 = scmp.lt.s32.totalorder %s350_s16, %s350_s16 }
   0xb   :  { %425 = vmatprep.subr.bf16.mxu0 %v501_v1  ;;  %v375_v19 = vld [vmem:[%s624_s4] ss:$0 sm:$0xff]  ;;  %p458_p0 = scmp.ne.s32.totalorder %s350_s16, %s457_s18  ;;  %p463_p2 = scmp.lt.s32.totalorder %s457_s18, %s457_s18 }
   0xc   :  { %416 = vmatpush3.bf16.msra.mxu1 %v447_v7  ;;  %v452_v28 = vld [vmem:[%s627_s7] sm:$0xff]  }
   0xd   :  { %417 = vmatprep.subr.bf16.mxu1 %v501_v1  ;;  %v381_v29 = vld [vmem:[%s626_s6] ss:$0 sm:$0xff]  ;;  %p464_p3 = por %p463_p2, %p462_p1 }
   0xe   :  { %426 = vmatpush3.bf16.msra.mxu0 %v450_v18  ;;  %v385_v36 = vld [vmem:[%s628_s8] ss:$0 sm:$0xff] }
   0xf   :  { %431 = vmatprep.subr.bf16.mxu0 %v501_v1  ;;  %p465_p4 = pnand %p464_p3, %p458_p0 }
  0x10   :  { %418 = vmatpush3.bf16.msra.mxu1 %v448_v8 }
  0xc9   :  { %v100_v11 = vpop.f32.mrf.mxu0 }
  0xca   :  { %v101_v12 = vadd.f32 %v371_v10, %v100_v11 }
  0xcb   :  { %v409_v13 = vpop.f32.mrf.mxu0 }
  0xcc   :  { %v106_v14 = vmax.f32 %v101_v12, 0.0 }
  0xcd   :  { %v103_v15 = vpop.f32.mrf.mxu0 }
  0xce   :  { %v107_v16 = vpack.c.bf16 %v106_v14, %v106_v14 }
  0xcf   :  { %v410_v17 = vpop.f32.mrf.mxu0 }
  0xd0   :  { %420 = vmatmul.mubr.msk.bf16.vlgmr.msra.gmra.mxu1 %vm147_vm2, %v107_v16 }
 0x190   :  { %v185_v20 = vpop.f32.mrf.mxu1 }
 0x191   :  { %v186_v21 = vadd.f32 %v375_v19, %v185_v20 }
 0x192   :  { %v421_v22 = vpop.f32.mrf.mxu1 }
 0x193   :  { %v191_v23 = vmax.f32 %v186_v21, 0.0 }
 0x194   :  { %v188_v24 = vpop.f32.mrf.mxu1 }
 0x195   :  { %v192_v26 = vpack.c.bf16 %v191_v23, %v191_v23 }
 0x196   :  { %v422_v27 = vpop.f32.mrf.mxu1 }
 0x197   :  { %428 = vmatmul.mubr.msk.bf16.vlgmr.msra.gmra.mxu0 %vm62_vm1, %v192_v26 }
 0x198   :  { %432 = vmatpush3.bf16.msra.mxu0 %v451_v25  ;;  %435 = vmatprep.mubr.msk.bf16.mxu0 %vm502_vm0, %v501_v1 }
 0x199   :  { %433 = vmatprep.subr.bf16.mxu0 %v501_v1 }
 0x19c   :  { %434 = vmatpush3.bf16.msra.mxu0 %v452_v28 }
 0x19f   :  { %436 = vmatmul.mubr.msk.bf16.vlgmr.msra.gmra.mxu0 %vm62_vm1, %v192_v26 }
 0x257   :  { %v253_v30 = vpop.f32.mrf.mxu0 }
 0x258   :  { %v254_v31 = vadd.f32 %v381_v29, %v253_v30 }
 0x259   :  { %v429_v32 = vpop.f32.mrf.mxu0 }
 0x25a   :  { %v338_v33 = vpack.c.bf16 %v254_v31, %v254_v31 }
 0x25b   :  { %v256_v34 = vpop.f32.mrf.mxu0 }
 0x25c   :  { %340 = vst.msk [vmem:[#allocation2] sm:$0xf] %vm339_vm3, %v338_v33 }
 0x25d   :  { %v430_v35 = vpop.f32.mrf.mxu0 }
 0x25e   :  { %468 = shalt.err (!%p465_p4)
}
 0x25f   :  { %352 = dma.vmem_to_hbm [thread:$0]  %s350_s16, 64, %s629_s9, [#allocation3]   ;;  %v316_v37 = vpop.f32.mrf.mxu0 }
 0x260   :  { %v317_v38 = vadd.f32 %v385_v36, %v316_v37  ;;  %s504_s8 = smov [#allocation4]  }
 0x261   :  { %v437_v39 = vpop.f32.mrf.mxu0  ;;  %s359_s9 = sshll.u32 %s504_s8, 4  ;;  %s360_s9 = int_to_ptr.vmem [resolvable:$true] %s359_s9 }
 0x262   :  { %v323_v40 = vand.u32 2147483647, %v317_v38  ;;  %v322_v53 = vmax.f32 %v317_v38, 0.0  ;;  %s477_s20 = scalar_lea.vmem %s360_s9, 64  ;;  %p482_p6 = scmp.lt.s32.totalorder %s360_s9, %s360_s9 }
 0x263   :  { %v319_v41 = vpop.f32.mrf.mxu0  ;;  %p478_p5 = scmp.ne.s32.totalorder %s360_s9, %s477_s20  ;;  %p483_p7 = scmp.lt.s32.totalorder %s477_s20, %s477_s20 }
 0x264   :  { %v324_v42 = vsub.f32 0.0, %v323_v40 }
 0x265   :  { %v438_v43 = vpop.f32.mrf.mxu0  ;;  %p484_p8 = por %p483_p7, %p482_p6 }
 0x266   :  { %v325_v44 = vmul.f32 1.442695, %v324_v42 }
 0x267   :  { %p485_p9 = pnand %p484_p8, %p478_p5 }
 0x268   :  { %453 = vpow2.f32 %v325_v44 }
 0x275   :  { %v454_v45 = vpop.eup %453 }
 0x276   :  { %v327_v46 = vadd.f32 1.0, %v454_v45  ;;  %v330_v47 = vmul.f32 -0.5, %v454_v45  ;;  %v333_v49 = vand.u32 2147483647, %v454_v45 }
 0x278   :  { %455 = vlog2.f32 %v327_v46  ;;  %v331_v48 = vadd.f32 1.0, %v330_v47  ;;  %vm334_vm4 = vcmp.lt.f32.partialorder %v333_v49, 0.0004427343 }
 0x27a   :  { %v332_v52 = vmul.f32 %v454_v45, %v331_v48 }
 0x285   :  { %v456_v50 = vpop.eup %455 }
 0x286   :  { %v329_v51 = vmul.f32 0.6931472, %v456_v50 }
 0x288   :  { %v335_v54 = vsel %vm334_vm4, %v332_v52, %v329_v51 }
 0x289   :  { %v336_v55 = vadd.f32 %v335_v54, %v322_v53 }
 0x28b   :  { %v337_v56 = vadd.f32 0.0001, %v336_v55 }
 0x28d   :  { %v341_v57 = vpack.c.bf16 %v337_v56, %v337_v56 }
 0x28f   :  { %342 = vst.msk [vmem:[#allocation4] sm:$0xf] %vm339_vm3, %v341_v57 }
 0x290   :  { %488 = shalt.err (!%p485_p9)
}
 0x291   :  { %362 = dma.vmem_to_hbm [thread:$0]  %s360_s9, 64, %s630_s10, [#allocation5]  }
 0x292   :  { %497 = dma.done.wait [#allocation3], 64  }
 0x293   :  { %498 = vsyncadd [#allocation3], 4294967232 }
 0x294   :  { %499 = dma.done.wait [#allocation5], 64  }
 0x295   :  { %500 = vsyncadd [#allocation5], 4294967232 }
 0x296   :  { %369 = vsyncpa [#allocation3], 1 }
 0x297   :  { %370 = vsyncpa [#allocation5], 1 }

</bundles_post_ra>
